<compile_context>
chip_gen: v5e
topology: v5e:2x2
jax: 0.10.0
libtpu: 0.0.40
codegen_flags: <defaults>
</compile_context>

<pallas_src>
import numpy as np
import jax
import jax.numpy as jnp
from jax import lax
from jax.experimental import pallas as pl
from jax.experimental.pallas import tpu as pltpu


def _round_up(x: int, m: int) -> int:
    return (x + m - 1) // m * m


def make_stft_bases(filter_length: int, hop_length: int):
    """Deterministic parameter init, mirroring STFT.__init__."""
    scale = filter_length / hop_length
    fourier_basis = np.fft.fft(np.eye(filter_length))
    cutoff = filter_length // 2 + 1
    fb = np.vstack(
        [np.real(fourier_basis[:cutoff, :]), np.imag(fourier_basis[:cutoff, :])]
    ).astype(np.float32)                                    # (2C, F) == forward_basis[:, 0, :]
    ib = np.linalg.pinv(scale * fb).T.astype(np.float32)    # (2C, F) == inverse_basis[:, 0, :]
    return fb, ib, cutoff


def _choose_row_tiling(R: int, max_tile_rows: int):
    """Lane-dense row tile, grid always even (v7x has 2 TensorCores)."""
    half = _round_up(max((R + 1) // 2, 128), 128)
    tile_rows = min(_round_up(max_tile_rows, 128), half)
    Rp = _round_up(R, 2 * tile_rows)
    return tile_rows, Rp


# ---------------------------------------------------------------------------
# Kernels
# ---------------------------------------------------------------------------
def _stft_folded_kernel(frames_ref, w_ref, z_ref):
    # frames_ref: (F, TR)  filter taps x frame-rows (rows on the lane axis)
    # w_ref:      (F, F)   folded basis  W = inverse_basis.T @ forward_basis
    # z_ref:      (F, TR)  conv_transpose taps per frame-row, in compute_dtype
    z = jnp.dot(w_ref[...], frames_ref[...], preferred_element_type=jnp.float32)
    z_ref[...] = z.astype(z_ref.dtype)


def _stft_magphase_kernel(frames_ref, wf_ref, wi_ref, z_ref):
    # Explicit magnitude/phase recombination path (spectral editing hook).
    # wf_ref: (2Cp, F) stacked forward basis [real; imag]
    # wi_ref: (F, 2Cp) stacked inverse basis [real | imag]
    cp = wf_ref.shape[0] // 2
    ft = frames_ref[...]
    y = jnp.dot(wf_ref[...], ft, preferred_element_type=jnp.float32)   # (2Cp, TR)
    real, imag = y[:cp], y[cp:]

    # cos(atan2(i,r)) = r/|z|, sin(atan2(i,r)) = i/|z|; rsqrt(msq+eps) keeps
    # the msq==0 (zero-padded channel) case finite without where-chains.
    msq = real * real + imag * imag
    inv_mag = lax.rsqrt(msq + 1e-30)                  # EUP slot, ~free under MXU
    mag = msq * inv_mag                               # == sqrt(msq) up to eps
    p = jnp.concatenate([mag * (real * inv_mag),      # == mag*cos(phase)
                         mag * (imag * inv_mag)],     # == mag*sin(phase)
                        axis=0).astype(wi_ref.dtype)  # (2Cp, TR)

    z = jnp.dot(wi_ref[...], p, preferred_element_type=jnp.float32)    # (F, TR)
    z_ref[...] = z.astype(z_ref.dtype)


# ---------------------------------------------------------------------------
# Wrapper
# ---------------------------------------------------------------------------
def stft_forward(x, filter_length: int = 16, hop_length: int = 8, *,
                 max_tile_rows: int = 2048, compute_dtype=jnp.bfloat16,
                 fold_recombine: bool = True):
    """Matches PyTorch STFT.forward: (B, L) -> (B, 1, L)."""
    assert filter_length % hop_length == 0, "gather-free framing assumes hop | filter_length"
    assert filter_length % 8 == 0
    B, L = x.shape
    F, hop = filter_length, hop_length
    K = F // hop
    fb, ib, cutoff = make_stft_bases(F, hop)

    # --- gather-free im2col, built directly transposed (F, R) in compute_dtype ---
    # Mirrors F.conv1d(..., stride=hop, padding=F):  frames_t[k*hop+j, b*T+t]
    #   = xp[b, (t+k)*hop + j]
    pad = F
    xp = jnp.pad(x.astype(compute_dtype), ((0, 0), (pad, pad)))
    Lp = L + 2 * pad
    T = (Lp - F) // hop + 1
    R = B * T
    S = T + K - 1                                     # S*hop == (T-1)*hop + F <= Lp
    xw = xp[:, :S * hop].reshape(B, S, hop).transpose(2, 0, 1)          # (hop, B, S)
    frames_t = jnp.concatenate(
        [xw[:, :, k:k + T].reshape(hop, R) for k in range(K)], axis=0)  # (F, R)

    tile_rows, Rp = _choose_row_tiling(R, max_tile_rows)
    frames_t = jnp.pad(frames_t, ((0, 0), (0, Rp - R)))
    grid = (Rp // tile_rows,)
    itemsize = np.dtype(compute_dtype).itemsize
    compiler_params = pltpu.CompilerParams(
        dimension_semantics=("parallel",),
        vmem_limit_bytes=8 * 1024 * 1024,
    )

    if fold_recombine:
        # mag/phase recombination is the identity -> single (F, F) basis.
        W = jnp.asarray((ib.T @ fb).astype(np.float32), compute_dtype)
        cost = pl.CostEstimate(
            flops=2 * F * F * Rp,
            transcendentals=0,
            bytes_accessed=2 * Rp * F * itemsize + F * F * itemsize,
        )
        z_t = pl.pallas_call(
            _stft_folded_kernel,
            out_shape=jax.ShapeDtypeStruct((F, Rp), compute_dtype),
            grid=grid,
            in_specs=[
                pl.BlockSpec((F, tile_rows), lambda i: (0, i)),   # frames tile (lane-dense)
                pl.BlockSpec((F, F), lambda i: (0, 0)),           # resident folded basis
            ],
            out_specs=pl.BlockSpec((F, tile_rows), lambda i: (0, i)),
            compiler_params=compiler_params,
            cost_estimate=cost,
        )(frames_t, W)
    else:
        # Explicit mag/phase path: stack bases host-side -> only 2 matmuls.
        Cp = _round_up(cutoff, 8)
        wf = np.zeros((2 * Cp, F), np.float32)
        wf[:cutoff] = fb[:cutoff]
        wf[Cp:Cp + cutoff] = fb[cutoff:]
        wi = np.zeros((F, 2 * Cp), np.float32)
        wi[:, :cutoff] = ib[:cutoff].T
        wi[:, Cp:Cp + cutoff] = ib[cutoff:].T
        wf = jnp.asarray(wf, compute_dtype)
        wi = jnp.asarray(wi, compute_dtype)
        cost = pl.CostEstimate(
            flops=8 * Cp * F * Rp,                    # two matmuls of depth F / 2Cp
            transcendentals=Cp * Rp,                  # rsqrt
            bytes_accessed=2 * Rp * F * itemsize + 4 * Cp * F * itemsize,
        )
        z_t = pl.pallas_call(
            _stft_magphase_kernel,
            out_shape=jax.ShapeDtypeStruct((F, Rp), compute_dtype),
            grid=grid,
            in_specs=[
                pl.BlockSpec((F, tile_rows), lambda i: (0, i)),
                pl.BlockSpec((2 * Cp, F), lambda i: (0, 0)),
                pl.BlockSpec((F, 2 * Cp), lambda i: (0, 0)),
            ],
            out_specs=pl.BlockSpec((F, tile_rows), lambda i: (0, i)),
            compiler_params=compiler_params,
            cost_estimate=cost,
        )(frames_t, wf, wi)

    # --- overlap-add (== conv_transpose1d(stride=hop)), f32 accumulation ---
    # TODO(synk): OLA + (R, F) de-interleave stays in the wrapper; hop=8 << 128
    # lanes and per-batch overlapping output spans don't map to disjoint
    # lane-dense output BlockSpecs at this filter size.
    z = z_t[:, :R].T.reshape(B, T, F).astype(jnp.float32)               # (B, T, F)
    out_len = (T - 1) * hop + F                                         # == (T + K - 1) * hop
    recon_full = jnp.zeros((B, out_len), jnp.float32)
    for k in range(K):
        chunk = z[:, :, k * hop:(k + 1) * hop].reshape(B, T * hop)
        recon_full = recon_full + jnp.pad(chunk, ((0, 0), (k * hop, (K - 1 - k) * hop)))
    recon = recon_full[:, F:F + L]                                      # [:, filter_length:][:, :num_samples]
    return recon[:, None, :]                                            # (B, 1, num_samples)


# ---------------------------------------------------------------------------
# Pure-JAX reference of the torch module's math (gather + atan2/cos/sin + scatter)
# ---------------------------------------------------------------------------
def _reference_forward(x, filter_length=16, hop_length=8):
    B, L = x.shape
    fb, ib, cutoff = make_stft_bases(filter_length, hop_length)
    pad = filter_length
    xp = jnp.pad(x.astype(jnp.float32), ((0, 0), (pad, pad)))
    T = (L + 2 * pad - filter_length) // hop_length + 1
    idx = jnp.arange(T)[:, None] * hop_length + jnp.arange(filter_length)[None, :]
    frames = xp[:, idx]                                                 # (B, T, F)
    y = jnp.einsum("btf,cf->btc", frames, jnp.asarray(fb))              # (B, T, 2C)
    real, imag = y[..., :cutoff], y[..., cutoff:]
    mag = jnp.sqrt(real * real + imag * imag)
    ph = jnp.arctan2(imag, real)
    recomb = jnp.concatenate([mag * jnp.cos(ph), mag * jnp.sin(ph)], axis=-1)
    z = jnp.einsum("btc,cf->btf", recomb, jnp.asarray(ib))
    out_len = (T - 1) * hop_length + filter_length
    pos = idx.reshape(-1)
    inv_full = jnp.zeros((B, out_len), jnp.float32).at[:, pos].add(
        z.reshape(B, T * filter_length))
    return inv_full[:, filter_length:filter_length + L][:, None, :]


if __name__ == "__main__":
    filter_length, hop_length = 16, 8
    B, L = 4, 2048                       # R = B*T = 1036 rows -> tile_rows=640, grid=2 (even)
    key = jax.random.PRNGKey(0)
    x = jax.random.normal(key, (B, L), dtype=jnp.float32)

    ref = _reference_forward(x, filter_length=filter_length, hop_length=hop_length)

    # Default fast path: folded single-matmul basis, bf16 MXU operands + bf16 output.
    out = stft_forward(x, filter_length=filter_length, hop_length=hop_length)
    out = jax.block_until_ready(out)
    assert out.shape == (B, 1, L), out.shape
    np.testing.assert_allclose(np.asarray(out), np.asarray(ref), rtol=2e-2, atol=2e-2)

    # Full-precision folded path, tight tolerance.
    out_f32 = jax.block_until_ready(
        stft_forward(x, filter_length=filter_length, hop_length=hop_length,
                     compute_dtype=jnp.float32))
    np.testing.assert_allclose(np.asarray(out_f32), np.asarray(ref), rtol=1e-3, atol=1e-3)

    # Explicit magnitude/phase path (spectral-editing hook), stacked bases.
    out_mp = jax.block_until_ready(
        stft_forward(x, filter_length=filter_length, hop_length=hop_length,
                     fold_recombine=False))
    np.testing.assert_allclose(np.asarray(out_mp), np.asarray(ref), rtol=2e-2, atol=2e-2)

    print("KERNEL_OK")
</pallas_src>

<mosaic_0001>
module attributes {stable_mosaic.version = 11 : i64} {
  func.func @_stft_folded_kernel(%arg0: i32, %arg1: memref<16x640xbf16, #tpu.memory_space<vmem>>, %arg2: memref<16x16xbf16, #tpu.memory_space<vmem>>, %arg3: memref<16x640xbf16, #tpu.memory_space<vmem>>) attributes {dimension_semantics = [#tpu.dimension_semantics<parallel>], iteration_bounds = array<i64: 2>, scalar_prefetch = 0 : i64, scratch_operands = 0 : i64, tpu.core_type = #tpu.core_type<tc>, window_params = [{transform_indices = @transform_0, window_bounds = array<i64: 16, 640>}, {pipeline_mode = #tpu.pipeline_mode<synchronous>, transform_indices = @transform_1, window_bounds = array<i64: 16, 16>}, {transform_indices = @transform_2, window_bounds = array<i64: 16, 640>}]} {
    %c0 = arith.constant 0 : index
    %c0_0 = arith.constant 0 : index
    %0 = vector.load %arg2[%c0, %c0_0] : memref<16x16xbf16, #tpu.memory_space<vmem>>, vector<16x16xbf16>
    %c0_1 = arith.constant 0 : index
    %c0_2 = arith.constant 0 : index
    %1 = vector.load %arg1[%c0_1, %c0_2] : memref<16x640xbf16, #tpu.memory_space<vmem>>, vector<16x640xbf16>
    %cst = arith.constant dense<0.000000e+00> : vector<16x640xf32>
    %2 = tpu.matmul %0, %1, %cst {dimension_numbers = #tpu.dot_dimension_numbers<[1], [0], [0], [1], [0, 0, 1, 1], [], []>} : vector<16x16xbf16>, vector<16x640xbf16>, vector<16x640xf32> -> vector<16x640xf32>
    %3 = arith.truncf %2 : vector<16x640xf32> to vector<16x640xbf16>
    %c0_3 = arith.constant 0 : index
    %c0_4 = arith.constant 0 : index
    %4 = vector.load %arg3[%c0_3, %c0_4] : memref<16x640xbf16, #tpu.memory_space<vmem>>, vector<16x640xbf16>
    tpu.vector_store %arg3[%c0_3, %c0_4], %3 {strides = array<i32>} : memref<16x640xbf16, #tpu.memory_space<vmem>>, vector<16x640xbf16>,
    return
  }
  func.func @transform_0(%arg0: i32) -> (i32, i32) {
    %c0_i32 = arith.constant 0 : i32
    %c0_i32_0 = arith.constant 0 : i32
    return %c0_i32, %arg0 : i32, i32
  }
  func.func @transform_1(%arg0: i32) -> (i32, i32) {
    %c0_i32 = arith.constant 0 : i32
    %c0_i32_0 = arith.constant 0 : i32
    %c0_i32_1 = arith.constant 0 : i32
    return %c0_i32, %c0_i32_0 : i32, i32
  }
  func.func @transform_2(%arg0: i32) -> (i32, i32) {
    %c0_i32 = arith.constant 0 : i32
    %c0_i32_0 = arith.constant 0 : i32
    return %c0_i32, %arg0 : i32, i32
  }
}

</mosaic_0001>

<bundles_post_ra>
// kernel: tpu_custom_call.1
= control target key start
LH: loop header
LB: loop body
LE: loop exit
PB: predicated region body
PF: predicated region fallthrough
CT: control target
= control target key end

     0   :  { %7 = vsyncpa [#allocation3], 0  ;;  %s820_s0 = inlined_call_operand.hbm [shape: bf16[16,1280], index: 0, kind: input, shape index: {}]   ;;  %s821_s1 = inlined_call_operand.hbm [shape: bf16[16,16], index: 1, kind: input, shape index: {}]   ;;  %s822_s2 = inlined_call_operand.hbm [shape: bf16[16,1280], index: 2, kind: output, shape index: {}]  }
   0x1   :  { %9 = vsyncpa [#allocation3 + $0x1], 0 }
   0x2   :  { %10 = vsyncpa [#allocation6], 0 }
   0x3   :  { %11 = vsyncpa [#allocation4], 0 }
   0x4   :  { %13 = vsyncpa [#allocation4 + $0x1], 0  ;;  %s678_s9 = smov 0   ;;  %s680_s10 = smov 0  }
   0x5   :  { %s682_s11 = smov 0   ;;  %s684_s12 = smov 0  }
   0x6 LB: > { %s699_s13 = sadd.s32 4294967295, %s652_s12   ;;  %s408_s14 = sadd.s32 4294967294, %s652_s12   ;;  %s652_s12 = sphi %s684_s12, %s832_s12   ;;  %s648_s11 = sphi %s682_s11, %s831_s11   ;;  %s644_s10 = sphi %s680_s10, %s830_s10   ;;  %s640_s9 = sphi %s678_s9, %s829_s9  }
   0x7   : > { %p39_p0 = scmp.ne.s32.totalorder %s644_s10, %s640_s9  ;;  %p40_p1 = scmp.eq.s32.totalorder %s699_s13, 0 }
   0x8   : > { %p84_p2 = scmp.eq.s32.totalorder %s699_s13, 1  ;;  %p90_p3 = scmp.eq.s32.totalorder %s408_s14, 1 }
   0x9   : > { %p708_p4 = por %p40_p1, %p39_p0  ;;  %p409_p5 = scmp.ge.s32.totalorder %s652_s12, 1 }
   0xa   : > { %p713_p6 = por %p90_p3, %p39_p0  ;;  %p97_p7 = scmp.lt.s32.totalorder %s652_s12, 3 }
   0xb   : > { %s108_s19 = sshll.u32 %s821_s1, 4  ;;  %s654_s21 = smov [#allocation5]   ;;  %s109_s19 = int_to_ptr.hbm [resolvable:$true] %s108_s19 }
   0xc   : > { %p721_p8 = pnand %p409_p5, %p97_p7  ;;  %s110_s22 = sshll.u32 %s654_s21, 4  ;;  %s111_s22 = int_to_ptr.vmem [resolvable:$true] %s110_s22 }
   0xd   : > { %s731_s23 = sadd.s32 1, %s652_s12   ;;  %s655_s24 = smov 64  }
   0xe   : > { %p465_p9 = pneg %p721_p8  ;;  %s656_s25 = smov 4  }
   0xf   : > { %s23_s26 = ssub.s32 %s652_s12, %s731_s23  ;;  %s26_s27 = sadd.s32 1, %s648_s11 }
  0x10   : > { %p466_p10 = pnand %p465_p9, %p40_p1  ;;  %p24_p12 = scmp.eq.s32.totalorder %s23_s26, 0 }
  0x11   : > { %p33_p13 = scmp.ne.s32.totalorder %s648_s11, %s644_s10  ;;  %p34_p0 = scmp.eq.s32.totalorder %s652_s12, 0 }
  0x12   : > { %468 = dma.hbm_to_vmem [thread:$0]  (!%p466_p10), %s109_s19, 128, %s111_s22, [#allocation6], %s655_s24, %s655_s24, %s656_s25  }
  0x13   : > { %p478_p3 = scmp.lt.s32.totalorder %s652_s12, 2  ;;  %p35_p5 = por %p34_p0, %p33_p13 }
  0x14   : > { %s741_s28 = scalar_select %p24_p12, %s648_s11, %s26_s27  }
  0x15   : > { %p745_p7 = por %p84_p2, %p33_p13  ;;  %s124_s30 = sand.u32 1, %s648_s11  }
  0x16   : > { %s447_s3 = smul.u32 20, %s652_s12  ;;  %p754_p9 = pnand %p478_p3, %p35_p5 }
  0x17   : > { %s455_s4 = smul.u32 40, %s124_s30  ;;  %s125_s19 = scalar_lea.sflag [#allocation3], %s124_s30 }
  0x18   : > { %s133_s7 = scalar_lea.hbm %s820_s0, %s447_s3  ;;  %p556_p10 = pneg %p754_p9 }
  0x19   : > { %s134_s14 = sshll.u32 %s133_s7, 4  ;;  %s128_s17 = scalar_lea.vmem [#allocation2], %s455_s4  ;;  %s135_s14 = int_to_ptr.hbm [resolvable:$true] %s134_s14 }
  0x1a   : > { %s136_s18 = sshll.u32 %s128_s17, 4  ;;  %s552_s21 = sshra.s32 %s135_s14, 4  ;;  %s137_s18 = int_to_ptr.vmem [resolvable:$true] %s136_s18  ;;  %s553_s21 = int_to_ptr.hbm [resolvable:$true] %s552_s21 }
  0x1b   : > { %s554_s22 = scalar_lea.hbm %s553_s21, 40  ;;  %s559_s26 = scalar_lea.hbm %s820_s0, 80 }
  0x1c   : > { %p555_p2 = scmp.ne.s32.totalorder %s553_s21, %s554_s22  ;;  %p560_p0 = scmp.lt.s32.totalorder %s553_s21, %s820_s0 }
  0x1d   : > { %p561_p3 = scmp.lt.s32.totalorder %s559_s26, %s554_s22 }
  0x1e   : > { %p557_p12 = pnand %p556_p10, %p555_p2 }
  0x1f   : > { %p562_p5 = por %p561_p3, %p560_p0 }
  0x20   : > { %p558_p13 = pneg %p557_p12 }
  0x22   : > { %p563_p11 = pnand %p562_p5, %p558_p13 }
  0x24   : > { %566 = shalt.err (!%p563_p11)
}
  0x25   : > { %s657_s30 = smov 640   ;;  %s658_s4 = smov 320  }
  0x26   : > { %s659_s5 = smov 20   ;;  %148 = sbr.rel (%p721_p8) target bundleno = 210 (0xd2), region = 28 }
  0x27   : > { %472 = dma.hbm_to_vmem [thread:$0]  (!%p754_p9), %s135_s14, 640, %s137_s18, %s125_s19, %s657_s30, %s658_s4, %s659_s5  }
  0x28   : > { %s771_s6 = sand.u32 (!%p721_p8), 1, %s644_s10  }
  0x29   : > { %s456_s7 = smul.u32 (!%p721_p8), 40, %s771_s6  ;;  %s151_s17 = scalar_lea.sflag (!%p721_p8), [#allocation3], %s771_s6 }
  0x2b   : > { %s154_s21 = scalar_lea.vmem [#allocation2], %s456_s7 }
  0x2c   : > { %627 = dma.done.wait (%p708_p4), %s151_s17, 640  }
  0x2d   : > { %629 = vsyncadd (%p708_p4), %s151_s17, 4294966656 }
  0x2e   : > { %631 = dma.done.wait (%p40_p1), [#allocation6], 128  }
  0x2f   : > { %633 = vsyncadd (%p40_p1), [#allocation6], 4294967168  ;;  %v421_v0 = vld [vmem:[%s154_s21] sm:$0xf]  ;;  %v451_v1 = vld [vmem:[%s154_s21 + $0x10] sm:$0xf0] }
  0x30   : > { %v449_v2 = vld [vmem:[%s154_s21 + $0x4] sm:$0xf]  ;;  %v422_v3 = vor.u32 %v451_v1, %v421_v0  ;;  %v423_v4 = vld [vmem:[%s154_s21 + $0x14] sm:$0xf0]  ;;  %v429_v5 = vld [vmem:[%s154_s21 + $0x8] sm:$0xf] }
  0x31   : > { %v452_v6 = vld [vmem:[%s154_s21 + $0x18] sm:$0xf0]  ;;  %v426_v7 = vor.u32 %v449_v2, %v423_v4  ;;  %v450_v9 = vld [vmem:[%s154_s21 + $0xc] sm:$0xf]  ;;  %v431_v10 = vld [vmem:[%s154_s21 + $0x1c] sm:$0xf0] }
  0x32   : > { %v430_v8 = vor.u32 %v452_v6, %v429_v5  ;;  %v448_v11 = vld [vmem:[#allocation5] sm:$0xff]  ;;  %234 = vmatpush.bf16.msra.mxu0 %v422_v3  ;;  %v434_v12 = vor.u32 %v450_v9, %v431_v10  ;;  %vm223_vm0 = vcmask 130048   ;;  %v453_v14 = vld [vmem:[%s154_s21 + $0x20] sm:$0xf0]  ;;  %s180_s15 = scalar_lea.vmem [#allocation7], %s456_s7  ;;  %s454_s20 = smul.u32 20, %s699_s13 }
  0x33   : > { %v437_v13 = vld [vmem:[%s154_s21 + $0x10] sm:$0xf]  ;;  %248 = vmatpush.bf16.msra.mxu1 %v426_v7  ;;  %s322_s19 = sshll.u32 %s180_s15, 4  ;;  %s310_s13 = scalar_lea.sflag [#allocation4], %s771_s6  ;;  %s323_s19 = int_to_ptr.vmem [resolvable:$true] %s322_s19 }
  0x34   : > { %262 = vmatpush.bf16.msra.mxu2 %v430_v8  ;;  %v438_v15 = vor.u32 %v453_v14, %v437_v13  ;;  %276 = vmatpush.bf16.msra.mxu3 %v434_v12  ;;  %s321_s18 = scalar_lea.hbm %s822_s2, %s454_s20  ;;  %s602_s3 = scalar_lea.hbm %s822_s2, 80 }
  0x35   : > { %439 = vmatmul.msk.bf16.vlgmr.msra.gmra.mxu0 %vm223_vm0, %v448_v11  ;;  %s324_s22 = sshll.u32 %s321_s18, 4  ;;  %s325_s22 = int_to_ptr.hbm [resolvable:$true] %s324_s22 }
  0x36   : > { %440 = vmatmul.msk.bf16.vlgmr.msra.gmra.mxu1 %vm223_vm0, %v448_v11  ;;  %290 = vmatpush.bf16.msrb.mxu0 %v438_v15  ;;  %s596_s24 = sshra.s32 %s325_s22, 4  ;;  %s597_s24 = int_to_ptr.hbm [resolvable:$true] %s596_s24 }
  0x37   : > { %441 = vmatmul.msk.bf16.vlgmr.msra.gmra.mxu2 %vm223_vm0, %v448_v11  ;;  %442 = vmatmul.msk.bf16.vlgmr.msra.gmra.mxu3 %vm223_vm0, %v448_v11  ;;  %s598_s25 = scalar_lea.hbm %s597_s24, 40  ;;  %p603_p11 = scmp.lt.s32.totalorder %s597_s24, %s822_s2 }
  0x38   : > { %p599_p1 = scmp.ne.s32.totalorder %s597_s24, %s598_s25  ;;  %p604_p9 = scmp.lt.s32.totalorder %s602_s3, %s598_s25 }
  0x3a   : > { %p600_p4 = pnand %p599_p1, %p745_p7  ;;  %p605_p2 = por %p604_p9, %p603_p11 }
  0x3c   : > { %p601_p8 = pneg %p600_p4 }
  0x3e   : > { %p606_p10 = pnand %p605_p2, %p601_p8 }
  0x45   : > { %443 = vmatmul.msk.bf16.vlgmr.msrb.gmra.mxu0 %vm223_vm0, %v448_v11 }
  0xb2   : > { %v236_v16 = vpop.f32.mrf.mxu0 }
  0xb3   : > { %v250_v17 = vpop.f32.mrf.mxu1 }
  0xb4   : > { %v297_v18 = vpack.c.bf16 %v250_v17, %v236_v16 }
  0xb6   : > { %303 = vst [vmem:[%s180_s15] sm:$0xff] %v297_v18 }
  0xba   : > { %v238_v19 = vpop.f32.mrf.mxu0  ;;  %v264_v20 = vpop.f32.mrf.mxu2 }
  0xbb   : > { %v252_v21 = vpop.f32.mrf.mxu1  ;;  %v278_v22 = vpop.f32.mrf.mxu3 }
  0xbc   : > { %v300_v23 = vpack.c.bf16 %v252_v21, %v238_v19  ;;  %v298_v24 = vpack.c.bf16 %v278_v22, %v264_v20 }
  0xbe   : > { %306 = vst [vmem:[%s180_s15 + $0x14] sm:$0xff] %v300_v23 }
  0xbf   : > { %304 = vst [vmem:[%s180_s15 + $0x8] sm:$0xff] %v298_v24 }
  0xc2   : > { %v266_v25 = vpop.f32.mrf.mxu2  ;;  %v292_v26 = vpop.f32.mrf.mxu0 }
  0xc3   : > { %v280_v27 = vpop.f32.mrf.mxu3  ;;  %v299_v28 = vpack.c.bf16 %v292_v26, %v292_v26 }
  0xc4   : > { %v301_v29 = vpack.c.bf16 %v280_v27, %v266_v25 }
  0xc5   : > { %305 = vst [vmem:[%s180_s15 + $0x10] sm:$0xf] %v299_v28 }
  0xc6   : > { %307 = vst [vmem:[%s180_s15 + $0x1c] sm:$0xff] %v301_v29 }
  0xca   : > { %v294_v30 = vpop.f32.mrf.mxu0 }
  0xcb   : > { %v302_v31 = vpack.c.bf16 %v294_v30, %v294_v30 }
  0xcd   : > { %308 = vst [vmem:[%s180_s15 + $0x24] sm:$0xf] %v302_v31 }
  0xce   : > { %609 = shalt.err (!%p606_p10)
}
  0xcf   : > { %s660_s5 = smov 320   ;;  %s661_s6 = smov 640  }
  0xd0   : > { %s662_s7 = smov 20  }
  0xd1   : > { %463 = dma.vmem_to_hbm [thread:$0]  (%p745_p7), %s323_s19, 640, %s325_s22, %s310_s13, %s660_s5, %s661_s6, %s662_s7  }
  0xd2 PF: > { %s339_s17 = sand.u32 1, %s640_s9   ;;  %p828_p12 = scmp.ge.s32.totalorder %s652_s12, 2 }
  0xd3   : > { %s340_s21 = scalar_lea.sflag [#allocation4], %s339_s17 }
  0xd4   : > { %p474_p13 = pnand %p828_p12, %p713_p6 }
  0xd6   : > { %p475_p0 = pneg %p474_p13 }
  0xd8   : > { %635 = dma.done.wait (%p475_p0), %s340_s21, 640  }
  0xd9   : > { %637 = vsyncadd (%p475_p0), %s340_s21, 4294966656  ;;  %p16_p3 = scmp.ge.s32.totalorder %s731_s23, 4   ;;  %s829_s9 = smov %s644_s10 }
  0xda   : > { %s830_s10 = smov %s648_s11  ;;  %s831_s11 = smov %s741_s28 }
  0xdb   : > { %s832_s12 = smov %s731_s23  ;;  %18 = sbr.rel (!%p16_p3) target bundleno = 6 (0x6), region = 77 }
  0xe0   :  { %346 = vsyncpa [#allocation3], 1 }
  0xe1   :  { %348 = vsyncpa [#allocation3 + $0x1], 1 }
  0xe2   :  { %349 = vsyncpa [#allocation6], 1 }
  0xe3   :  { %350 = vsyncpa [#allocation4], 1 }
  0xe4   :  { %352 = vsyncpa [#allocation4 + $0x1], 1 }

</bundles_post_ra>
